<compile_context>
chip_gen: v7x
topology: tpu7x:2x2x1
jax: 0.10.0
libtpu: 0.0.40
codegen_flags: <defaults>
</compile_context>

<pallas_src>
import jax
import jax.numpy as jnp
from jax.experimental import pallas as pl
from jax.experimental.pallas import tpu as pltpu


def policy_kernel(xT_ref, w1_ref, b1_ref, w2_ref, b2_ref, outT_ref):
    # xT: [S, TB]  (batch on lanes), W1: [H, S], b1: [H, 1], W2: [A, H], b2: [A, 1]
    xT = xT_ref[...]
    # fc1 + ReLU:  h^T = relu(W1 @ x^T + b1)        -> [H, TB]
    h = jnp.dot(w1_ref[...], xT, preferred_element_type=jnp.float32)
    h = jnp.maximum(h + b1_ref[...], 0.0)
    # out:         logits^T = W2 @ h^T + b2          -> [A, TB]
    logits = jnp.dot(w2_ref[...], h, preferred_element_type=jnp.float32)
    logits = logits + b2_ref[...]

    # Row-wise softmax over the A sublane rows, unrolled as pure VPU row ops
    # (A is static at trace time; no cross-lane reduce needed).
    a_dim = logits.shape[0]
    m = logits[0:1, :]
    for a in range(1, a_dim):
        m = jnp.maximum(m, logits[a:a + 1, :])
    e = jnp.exp(logits - m)
    s = e[0:1, :]
    for a in range(1, a_dim):
        s = s + e[a:a + 1, :]
    # Exact divide for exact normalization (approx reciprocal broke 1e-5 tolerance).
    outT_ref[...] = (e / s).astype(outT_ref.dtype)


def _round_up(v, m):
    return ((v + m - 1) // m) * m


def policy_forward(x, w1, b1, w2, b2, *, block_batch=8192):
    """Forward pass of Policy.

    x:  [batch, state_dim]          float32
    w1: [hidden, state_dim]  (PyTorch layout), b1: [hidden]
    w2: [action_dim, hidden] (PyTorch layout), b2: [action_dim]
    returns probs: [batch, action_dim]
    """
    batch, state_dim = x.shape
    hidden = w1.shape[0]
    action_dim = w2.shape[0]

    # ---- Batch tiling on the lane axis (must be a multiple of 128). ----
    padded_min = _round_up(batch, 128)
    tb = min(_round_up(block_batch, 128), padded_min)
    # v7x has 2 TensorCores: keep >= 2 parallel blocks when the batch allows it.
    if padded_min // tb < 2 and padded_min >= 256:
        tb = _round_up(pl.cdiv(padded_min, 2), 128)
    n_blocks = pl.cdiv(padded_min, tb)
    padded = n_blocks * tb

    # ---- One-time wrapper-side layout: batch onto lanes. ----
    # PyTorch [out, in] weights are already in the right orientation for
    # W @ x^T; biases become column vectors that broadcast along lanes.
    xT = jnp.asarray(x, jnp.float32).T                       # [S, batch]
    if padded != batch:
        xT = jnp.pad(xT, ((0, 0), (0, padded - batch)))      # zero cols -> finite softmax, sliced off
    w1_ = jnp.asarray(w1, jnp.float32)                       # [H, S]
    w2_ = jnp.asarray(w2, jnp.float32)                       # [A, H]
    b1_col = jnp.asarray(b1, jnp.float32).reshape(hidden, 1)
    b2_col = jnp.asarray(b2, jnp.float32).reshape(action_dim, 1)

    # VMEM budget from the actual tile footprint (sublane-padded to 8 rows),
    # double-buffered input + output blocks, plus headroom for the tiny weights.
    blk_bytes = 8 * tb * 4
    vmem_bytes = int(min(48 * 1024 * 1024,
                         max(4 * 1024 * 1024, 6 * blk_bytes + (1 << 20))))

    outT = pl.pallas_call(
        policy_kernel,
        out_shape=jax.ShapeDtypeStruct((action_dim, padded), jnp.float32),
        grid=(n_blocks,),
        in_specs=[
            # batch-tiled transposed input (lane-dense)
            pl.BlockSpec((state_dim, tb), lambda i: (0, i)),
            # weights / biases resident in VMEM across all grid steps
            pl.BlockSpec((hidden, state_dim), lambda i: (0, 0)),
            pl.BlockSpec((hidden, 1), lambda i: (0, 0)),
            pl.BlockSpec((action_dim, hidden), lambda i: (0, 0)),
            pl.BlockSpec((action_dim, 1), lambda i: (0, 0)),
        ],
        out_specs=pl.BlockSpec((action_dim, tb), lambda i: (0, i)),
        compiler_params=pltpu.CompilerParams(
            dimension_semantics=("parallel",),
            vmem_limit_bytes=vmem_bytes,
        ),
    )(xT, w1_, b1_col, w2_, b2_col)

    # Back to [batch, action_dim] in the wrapper.
    return outT[:, :batch].T


def reference_forward(x, w1, b1, w2, b2):
    h = jnp.maximum(x @ w1.T + b1.reshape(1, -1), 0.0)
    logits = h @ w2.T + b2.reshape(1, -1)
    return jax.nn.softmax(logits, axis=1)


if __name__ == "__main__":
    batch = 8
    state_dim = 4
    hidden = 10
    action_dim = 3

    key = jax.random.PRNGKey(0)
    k_x, k_w1, k_b1, k_w2, k_b2 = jax.random.split(key, 5)

    x = jax.random.normal(k_x, (batch, state_dim), dtype=jnp.float32)

    # Parameter init mirroring the module's __init__ (PyTorch layouts):
    #   fc1.weight ~ N(0, 0.1) [hidden, state_dim], out.weight ~ N(0, 0.1) [action_dim, hidden]
    w1 = 0.1 * jax.random.normal(k_w1, (hidden, state_dim), dtype=jnp.float32)
    b1 = 0.05 * jax.random.uniform(k_b1, (hidden,), dtype=jnp.float32)
    w2 = 0.1 * jax.random.normal(k_w2, (action_dim, hidden), dtype=jnp.float32)
    b2 = 0.05 * jax.random.uniform(k_b2, (action_dim,), dtype=jnp.float32)

    probs = policy_forward(x, w1, b1, w2, b2)
    probs = jax.block_until_ready(probs)

    ref = reference_forward(x, w1, b1, w2, b2)
    assert probs.shape == (batch, action_dim)
    assert jnp.allclose(probs, ref, atol=1e-5, rtol=1e-5)
    assert jnp.allclose(jnp.sum(probs, axis=1), 1.0, atol=1e-5)

    # Also exercise the gridded path (2 batch tiles, weights resident across steps).
    big_batch = 2048
    xb = jax.random.normal(jax.random.PRNGKey(1), (big_batch, state_dim), dtype=jnp.float32)
    probs_big = jax.block_until_ready(policy_forward(xb, w1, b1, w2, b2, block_batch=8192))
    ref_big = reference_forward(xb, w1, b1, w2, b2)
    assert probs_big.shape == (big_batch, action_dim)
    assert jnp.allclose(probs_big, ref_big, atol=1e-5, rtol=1e-5)

    print("KERNEL_OK")
</pallas_src>

<mosaic_0001>
module attributes {stable_mosaic.version = 11 : i64} {
  func.func @policy_kernel(%arg0: i32, %arg1: memref<4x128xf32, #tpu.memory_space<vmem>>, %arg2: memref<10x4xf32, #tpu.memory_space<vmem>>, %arg3: memref<10x1xf32, #tpu.memory_space<vmem>>, %arg4: memref<3x10xf32, #tpu.memory_space<vmem>>, %arg5: memref<3x1xf32, #tpu.memory_space<vmem>>, %arg6: memref<3x128xf32, #tpu.memory_space<vmem>>) attributes {dimension_semantics = [#tpu.dimension_semantics<parallel>], iteration_bounds = array<i64: 1>, scalar_prefetch = 0 : i64, scratch_operands = 0 : i64, tpu.core_type = #tpu.core_type<tc>, window_params = [{transform_indices = @transform_0, window_bounds = array<i64: 4, 128>}, {pipeline_mode = #tpu.pipeline_mode<synchronous>, transform_indices = @transform_1, window_bounds = array<i64: 10, 4>}, {pipeline_mode = #tpu.pipeline_mode<synchronous>, transform_indices = @transform_2, window_bounds = array<i64: 10, 1>}, {pipeline_mode = #tpu.pipeline_mode<synchronous>, transform_indices = @transform_3, window_bounds = array<i64: 3, 10>}, {pipeline_mode = #tpu.pipeline_mode<synchronous>, transform_indices = @transform_4, window_bounds = array<i64: 3, 1>}, {transform_indices = @transform_5, window_bounds = array<i64: 3, 128>}]} {
    %c0 = arith.constant 0 : index
    %c0_0 = arith.constant 0 : index
    %0 = vector.load %arg1[%c0, %c0_0] : memref<4x128xf32, #tpu.memory_space<vmem>>, vector<4x128xf32>
    %c0_1 = arith.constant 0 : index
    %c0_2 = arith.constant 0 : index
    %1 = vector.load %arg2[%c0_1, %c0_2] : memref<10x4xf32, #tpu.memory_space<vmem>>, vector<10x4xf32>
    %cst = arith.constant dense<0.000000e+00> : vector<10x128xf32>
    %2 = tpu.matmul %1, %0, %cst {dimension_numbers = #tpu.dot_dimension_numbers<[1], [0], [0], [1], [0, 0, 1, 1], [], []>} : vector<10x4xf32>, vector<4x128xf32>, vector<10x128xf32> -> vector<10x128xf32>
    %c0_3 = arith.constant 0 : index
    %c0_4 = arith.constant 0 : index
    %3 = vector.load %arg3[%c0_3, %c0_4] : memref<10x1xf32, #tpu.memory_space<vmem>>, vector<10x1xf32>
    %4 = vector.broadcast %3 : vector<10x1xf32> to vector<10x128xf32>
    %5 = arith.addf %2, %4 : vector<10x128xf32>
    %cst_5 = arith.constant 0.000000e+00 : f32
    %6 = vector.broadcast %cst_5 : f32 to vector<10x128xf32>
    %7 = arith.maximumf %5, %6 : vector<10x128xf32>
    %c0_6 = arith.constant 0 : index
    %c0_7 = arith.constant 0 : index
    %8 = vector.load %arg4[%c0_6, %c0_7] : memref<3x10xf32, #tpu.memory_space<vmem>>, vector<3x10xf32>
    %cst_8 = arith.constant dense<0.000000e+00> : vector<3x128xf32>
    %9 = tpu.matmul %8, %7, %cst_8 {dimension_numbers = #tpu.dot_dimension_numbers<[1], [0], [0], [1], [0, 0, 1, 1], [], []>} : vector<3x10xf32>, vector<10x128xf32>, vector<3x128xf32> -> vector<3x128xf32>
    %c0_9 = arith.constant 0 : index
    %c0_10 = arith.constant 0 : index
    %10 = vector.load %arg5[%c0_9, %c0_10] : memref<3x1xf32, #tpu.memory_space<vmem>>, vector<3x1xf32>
    %11 = vector.broadcast %10 : vector<3x1xf32> to vector<3x128xf32>
    %12 = arith.addf %9, %11 : vector<3x128xf32>
    %13 = vector.extract_strided_slice %12 {offsets = [0, 0], sizes = [1, 128], strides = [1, 1]} : vector<3x128xf32> to vector<1x128xf32>
    %14 = vector.extract_strided_slice %12 {offsets = [1, 0], sizes = [1, 128], strides = [1, 1]} : vector<3x128xf32> to vector<1x128xf32>
    %15 = arith.maximumf %13, %14 : vector<1x128xf32>
    %16 = vector.extract_strided_slice %12 {offsets = [2, 0], sizes = [1, 128], strides = [1, 1]} : vector<3x128xf32> to vector<1x128xf32>
    %17 = arith.maximumf %15, %16 : vector<1x128xf32>
    %18 = vector.broadcast %17 : vector<1x128xf32> to vector<3x128xf32>
    %19 = arith.subf %12, %18 : vector<3x128xf32>
    %20 = math.exp %19 : vector<3x128xf32>
    %21 = vector.extract_strided_slice %20 {offsets = [0, 0], sizes = [1, 128], strides = [1, 1]} : vector<3x128xf32> to vector<1x128xf32>
    %22 = vector.extract_strided_slice %20 {offsets = [1, 0], sizes = [1, 128], strides = [1, 1]} : vector<3x128xf32> to vector<1x128xf32>
    %23 = arith.addf %21, %22 : vector<1x128xf32>
    %24 = vector.extract_strided_slice %20 {offsets = [2, 0], sizes = [1, 128], strides = [1, 1]} : vector<3x128xf32> to vector<1x128xf32>
    %25 = arith.addf %23, %24 : vector<1x128xf32>
    %26 = vector.broadcast %25 : vector<1x128xf32> to vector<3x128xf32>
    %27 = arith.divf %20, %26 : vector<3x128xf32>
    %c0_11 = arith.constant 0 : index
    %c0_12 = arith.constant 0 : index
    %28 = vector.load %arg6[%c0_11, %c0_12] : memref<3x128xf32, #tpu.memory_space<vmem>>, vector<3x128xf32>
    tpu.vector_store %arg6[%c0_11, %c0_12], %27 {strides = array<i32>} : memref<3x128xf32, #tpu.memory_space<vmem>>, vector<3x128xf32>,
    return
  }
  func.func @transform_0(%arg0: i32) -> (i32, i32) {
    %c0_i32 = arith.constant 0 : i32
    %c0_i32_0 = arith.constant 0 : i32
    return %c0_i32, %arg0 : i32, i32
  }
  func.func @transform_1(%arg0: i32) -> (i32, i32) {
    %c0_i32 = arith.constant 0 : i32
    %c0_i32_0 = arith.constant 0 : i32
    %c0_i32_1 = arith.constant 0 : i32
    return %c0_i32, %c0_i32_0 : i32, i32
  }
  func.func @transform_2(%arg0: i32) -> (i32, i32) {
    %c0_i32 = arith.constant 0 : i32
    %c0_i32_0 = arith.constant 0 : i32
    %c0_i32_1 = arith.constant 0 : i32
    return %c0_i32, %c0_i32_0 : i32, i32
  }
  func.func @transform_3(%arg0: i32) -> (i32, i32) {
    %c0_i32 = arith.constant 0 : i32
    %c0_i32_0 = arith.constant 0 : i32
    %c0_i32_1 = arith.constant 0 : i32
    return %c0_i32, %c0_i32_0 : i32, i32
  }
  func.func @transform_4(%arg0: i32) -> (i32, i32) {
    %c0_i32 = arith.constant 0 : i32
    %c0_i32_0 = arith.constant 0 : i32
    %c0_i32_1 = arith.constant 0 : i32
    return %c0_i32, %c0_i32_0 : i32, i32
  }
  func.func @transform_5(%arg0: i32) -> (i32, i32) {
    %c0_i32 = arith.constant 0 : i32
    %c0_i32_0 = arith.constant 0 : i32
    return %c0_i32, %arg0 : i32, i32
  }
}

</mosaic_0001>

<bundles_post_ra>
// kernel: tpu_custom_call.1
= control target key start
LH: loop header
LB: loop body
LE: loop exit
PB: predicated region body
PF: predicated region fallthrough
CT: control target
= control target key end

     0   :  { %vm43_vm0 = vcmask 1043456   ;;  %vm36_vm1 = vcmask 31744   ;;  %v314_v4 = vmov 0   ;;  %s383_s0 = inlined_call_operand.vmem [shape: f32[4,128], index: 0, kind: input, shape index: {}]   ;;  %s384_s1 = inlined_call_operand.vmem [shape: f32[10,4], index: 1, kind: input, shape index: {}]   ;;  %s385_s2 = inlined_call_operand.vmem [shape: f32[10,1], index: 2, kind: input, shape index: {}]   ;;  %s386_s3 = inlined_call_operand.vmem [shape: f32[3,10], index: 3, kind: input, shape index: {}]   ;;  %s387_s4 = inlined_call_operand.vmem [shape: f32[3,1], index: 4, kind: input, shape index: {}]   ;;  %s388_s5 = inlined_call_operand.hbm [shape: f32[3,128], index: 5, kind: output, shape index: {}]  }
   0x1   :  { %v21_v0 = vld [vmem:[%s383_s0] sm:$0xf]  ;;  %v23_v2 = vld [vmem:[%s384_s1 + $0x8] sm:$0x3]  ;;  %284 = vset.pattern.permute.xlu0 %v314_v4 }
   0x2   :  { %v22_v1 = vld [vmem:[%s384_s1] sm:$0xff]  ;;  %262 = vmatprep.subr.msk.mxu0 %vm43_vm0, %v21_v0 }
   0x3   :  { %264 = vmatprep.mubr.msk.f32.mxu0 %vm36_vm1, %v22_v1  ;;  %v24_v3 = vld [vmem:[%s385_s2] sm:$0xff]  ;;  %263 = vmatpush3.msk.msra.mxu0 %vm43_vm0, %v21_v0 }
   0x4   :  { %10 = vsyncpa [#allocation3], 0  ;;  %265 = vmatmul.mubr.msk.f32.vlgmr.msra.gmra.mrb[0].mxu0 %vm36_vm1, %v23_v2  ;;  %28 = vperm.xlu0 %284, %v24_v3   ;;  %v25_v5 = vld [vmem:[%s385_s2 + $0x8] sm:$0x3]  ;;  %v315_v6 = vmov 0.0|0.0   ;;  %vm316_vm2 = vmmov 0   ;;  %v216_v19 = vlaneseq }
   0x5   :  { %285 = vset.pattern.permute.xlu1 %v314_v4  ;;  %274 = vmatprep.subr.bf16.mxu1 %v315_v6  ;;  %v317_v7 = vmov 0.0   ;;  %v125_v8 = vld [vmem:[%s387_s4] sm:$0x7]  ;;  %vm135_vm3 = vcmask 1041408   ;;  %vm318_vm4 = vmmov 1   ;;  %vm131_vm6 = vcmask 80896  }
   0x6   :  { %271 = vmatprep.mubr.msk.f32.mxu1 %vm316_vm2, %v317_v7  ;;  %128 = vperm.xlu1 %285, %v125_v8   ;;  %vm276_vm5 = vmpackc.low %vm135_vm3, %vm318_vm4  ;;  %v124_v18 = vld [vmem:[%s386_s3] sm:$0x7]  ;;  %v217_v23 = vshrl.u32 %v216_v19, 7  ;;  %s319_s3 = smov [#allocation2]  }
   0x7   :  { %s243_s4 = sshll.u32 %s319_s3, 4  ;;  %s244_s4 = int_to_ptr.vmem [resolvable:$true] %s243_s4 }
   0x8   :  { %33 = vperm.xlu0 %284, %v25_v5   ;;  %v218_v28 = vsub.s32 0, %v217_v23  ;;  %s290_s29 = scalar_lea.vmem %s244_s4, 64  ;;  %p295_p1 = scmp.lt.s32.totalorder %s244_s4, %s244_s4 }
   0x9   :  { %p291_p0 = scmp.ne.s32.totalorder %s244_s4, %s290_s29  ;;  %p296_p2 = scmp.lt.s32.totalorder %s290_s29, %s290_s29 }
   0xb   :  { %p297_p3 = por %p296_p2, %p295_p1 }
   0xd   :  { %p298_p4 = pnand %p297_p3, %p291_p0 }
  0x83   :  { %v29_v9 = vpop.permute.xlu0 %28 }
  0x85   :  { %v129_v20 = vpop.permute.xlu1 %128 }
  0x87   :  { %v34_v10 = vpop.permute.xlu0 %33 }
  0xd7   :  { %v266_v11 = vpop.f32.mrb[0].mxu0 }
  0xd8   :  { %v119_v12 = vadd.f32 %v266_v11, %v34_v10  ;;  %v113_v13 = vpop.f32.mrb[1].mxu0 }
  0xd9   :  { %v114_v14 = vadd.f32 %v113_v13, %v29_v9 }
  0xda   :  { %v123_v15 = vmax.f32 %v119_v12, 0.0 }
  0xdb   :  { %v122_v16 = vmax.f32 %v114_v14, 0.0 }
  0xdd   :  { %v275_v17 = vpack.c.bf16 %v123_v15, %v122_v16 }
  0xdf   :  { %277 = vmatpush3.bf16.msk.msra.mxu1 %vm276_vm5, %v275_v17 }
  0xe2   :  { %272 = vmatmul.mubr.msk.f32.vlgmr.msra.gmra.mrb[0].mxu1 %vm131_vm6, %v124_v18 }
 0x1b5   :  { %v205_v21 = vpop.f32.mrb[0].mxu1 }
 0x1b6   :  { %v206_v22 = vadd.f32 %v205_v21, %v129_v20  ;;  %v273_v24 = vpop.f32.mrb[1].mxu1 }
 0x1b8   :  { %v210_v25 = vrot.slane %v206_v22, 1  ;;  %v213_v27 = vrot.slane %v206_v22, 2 }
 0x1ba   :  { %v212_v26 = vmax.f32 %v206_v22, %v210_v25 }
 0x1bc   :  { %v215_v29 = vmax.f32 %v212_v26, %v213_v27 }
 0x1be   :  { %v219_v30 = vrot.slane %v215_v29, %v218_v28 }
 0x1c0   :  { %v220_v31 = vsub.f32 %v206_v22, %v219_v30 }
 0x1c2   :  { %v221_v32 = vmul.f32 1.442695, %v220_v31 }
 0x1c4   :  { %286 = vpow2.f32 %v221_v32 }
 0x1ce   :  { %v287_v33 = vpop.eup %286 }
 0x1cf   :  { %v224_v34 = vrot.slane %v287_v33, 1  ;;  %v227_v36 = vrot.slane %v287_v33, 2 }
 0x1d1   :  { %v226_v35 = vadd.f32 %v287_v33, %v224_v34 }
 0x1d3   :  { %v229_v37 = vadd.f32 %v227_v36, %v226_v35 }
 0x1d5   :  { %v233_v38 = vrot.slane %v229_v37, %v218_v28 }
 0x1d7   :  { %288 = vrcp.f32 %v233_v38 }
 0x1e1   :  { %v289_v39 = vpop.eup %288 }
 0x1e2   :  { %v235_v40 = vmul.f32 %v289_v39, %v287_v33 }
 0x1e4   :  { %236 = vst [vmem:[#allocation2] sm:$0x7] %v235_v40 }
 0x1e5   :  { %301 = shalt.err (!%p298_p4)
}
 0x1e6   :  { %s302_s7 = scalar_lea.hbm %s388_s5, 64 }
 0x1e7   :  { %p303_p5 = scmp.ne.s32.totalorder %s388_s5, %s302_s7  ;;  %p306_p6 = scmp.lt.u32.totalorder %s302_s7, %s388_s5 }
 0x1e9   :  { %p308_p7 = pnand %p306_p6, %p303_p5 }
 0x1eb   :  { %311 = shalt.err (!%p308_p7)
}
 0x1ec   :  { %246 = dma.vmem_to_hbm [thread:$0]  %s244_s4, 64, %s388_s5, [#allocation3]  }
 0x1ed   :  { %312 = dma.done.wait [#allocation3], 64  }
 0x1ee   :  { %313 = vsyncadd [#allocation3], 4294967232 }
 0x1ef   :  { %250 = vsyncpa [#allocation3], 1 }

</bundles_post_ra>
